<compile_context>
chip_gen: v5e
topology: v5e:2x2
jax: 0.10.0
libtpu: 0.0.40
codegen_flags: <defaults>
</compile_context>

<pallas_src>
import jax
import jax.numpy as jnp
from jax.experimental import pallas as pl
from jax.experimental.pallas import tpu as pltpu


_LANE = 128
_RESIDENCY_BUDGET_BYTES = 36 * 1024 * 1024   # regime-A working-set budget
_VMEM_LIMIT_BYTES = 48 * 1024 * 1024         # safe on v7x (64 MiB physical)


def _round_up(a, b):
    return (a + b - 1) // b * b


# --------------------------------------------------------------------------
# Regime A: x fully resident in VMEM, adj streamed as (bm, Np) row slabs.
# --------------------------------------------------------------------------
def _make_resident_kernel(bm):
    def kernel(adj_ref, x_ref, o_ref):
        i = pl.program_id(0)
        # (adj + I) @ x for this row slab = adj_slab @ x + x[i*bm : i*bm+bm]
        acc = jnp.dot(adj_ref[...], x_ref[...],
                      preferred_element_type=jnp.float32)
        off = pl.multiple_of(i * bm, bm)
        o_ref[...] = acc + x_ref[pl.ds(off, bm), :].astype(jnp.float32)
    return kernel


# --------------------------------------------------------------------------
# Regime B: rectangular (bm, bk) adj tiles, x tiled by bk, k-reduction last.
# Accumulates directly into the VMEM-resident f32 output tile (no scratch).
# --------------------------------------------------------------------------
def _make_tiled_kernel(bm, bk):
    g = bk // bm   # row tiles per reduction tile (bk % bm == 0 by construction)

    def kernel(adj_ref, x_ref, o_ref):
        i = pl.program_id(0)
        k = pl.program_id(1)

        @pl.when(k == 0)
        def _init():
            o_ref[...] = jnp.zeros_like(o_ref)

        o_ref[...] += jnp.dot(adj_ref[...], x_ref[...],
                              preferred_element_type=jnp.float32)

        # Identity block of row-tile i lives in reduction tile i // g at row
        # offset (i % g) * bm within that x tile.
        @pl.when(k == i // g)
        def _self_loop():
            off = pl.multiple_of((i % g) * bm, bm)
            o_ref[...] += x_ref[pl.ds(off, bm), :].astype(jnp.float32)

    return kernel


def lightgcn_forward(x, adj, *, compute_dtype=None,
                     residency_budget_bytes=_RESIDENCY_BUDGET_BYTES,
                     max_block_k=2048):
    """x: [N, F] node features, adj: [N, N].  Returns (adj + I) @ x (f32 math)."""
    N, F = x.shape
    assert adj.shape == (N, N)
    out_dtype = x.dtype

    in_dtype = jnp.dtype(compute_dtype) if compute_dtype is not None else jnp.dtype(x.dtype)
    isize = in_dtype.itemsize

    Np = _round_up(N, _LANE)                 # node dim: minimal 128-alignment
    Fp = _round_up(F, _LANE)                 # lane-dense feature dim

    # Largest MXU/lane-aligned row tile that divides Np (keeps padding minimal;
    # on v7x a bm this size still leaves >= 2 row tiles for any non-tiny graph
    # so both TensorCores get work via the "parallel" row axis).
    bm = next(b for b in (512, 256, 128) if Np % b == 0)
    nb = Np // bm

    # Conditional padding / casting only (see TODOs above re: hoisting this).
    x_in = x if (Np, Fp) == (N, F) else jnp.pad(x, ((0, Np - N), (0, Fp - F)))
    adj_in = adj if Np == N else jnp.pad(adj, ((0, Np - N), (0, Np - N)))
    if in_dtype != x_in.dtype:
        x_in = x_in.astype(in_dtype)
        adj_in = adj_in.astype(in_dtype)

    cost = pl.CostEstimate(
        flops=2 * Np * Np * Fp,
        transcendentals=0,
        bytes_accessed=Np * Np * isize + Np * Fp * isize + Np * Fp * 4,
    )

    # Working set for the resident-x regime (conservatively double-buffered).
    resident_bytes = (2 * bm * Np + 2 * Np * Fp) * isize + 2 * bm * Fp * 4

    if resident_bytes <= residency_budget_bytes:
        # ---------------- Regime A ----------------
        out_p = pl.pallas_call(
            _make_resident_kernel(bm),
            out_shape=jax.ShapeDtypeStruct((Np, Fp), jnp.float32),
            grid_spec=pltpu.PrefetchScalarGridSpec(
                num_scalar_prefetch=0,
                grid=(nb,),
                in_specs=[
                    pl.BlockSpec((bm, Np), lambda i: (i, 0)),   # adj row slab
                    pl.BlockSpec((Np, Fp), lambda i: (0, 0)),   # x resident
                ],
                out_specs=pl.BlockSpec((bm, Fp), lambda i: (i, 0)),
            ),
            compiler_params=pltpu.CompilerParams(
                dimension_semantics=("parallel",),
                vmem_limit_bytes=_VMEM_LIMIT_BYTES,
            ),
            cost_estimate=cost,
        )(adj_in, x_in)
    else:
        # ---------------- Regime B ----------------
        # bk = bm * g, with g the largest divisor of nb keeping bk <= max_block_k.
        g_max = max(1, min(max_block_k, 2048) // bm)
        g = next(d for d in range(min(g_max, nb), 0, -1) if nb % d == 0)
        bk = bm * g
        out_p = pl.pallas_call(
            _make_tiled_kernel(bm, bk),
            out_shape=jax.ShapeDtypeStruct((Np, Fp), jnp.float32),
            grid_spec=pltpu.PrefetchScalarGridSpec(
                num_scalar_prefetch=0,
                grid=(nb, Np // bk),
                in_specs=[
                    pl.BlockSpec((bm, bk), lambda i, k: (i, k)),   # adj tile
                    pl.BlockSpec((bk, Fp), lambda i, k: (k, 0)),   # x k-tile
                ],
                out_specs=pl.BlockSpec((bm, Fp), lambda i, k: (i, 0)),
            ),
            compiler_params=pltpu.CompilerParams(
                dimension_semantics=("parallel", "arbitrary"),
                vmem_limit_bytes=_VMEM_LIMIT_BYTES,
            ),
            cost_estimate=cost,
        )(adj_in, x_in)

    return out_p[:N, :F].astype(out_dtype)


if __name__ == "__main__":
    key = jax.random.PRNGKey(0)
    k1, k2, k3, k4, k5, k6 = jax.random.split(key, 6)

    # Small shapes consistent with the module: N nodes, F-dim embeddings.
    N, F = 16, 32
    x = jax.random.normal(k1, (N, F), jnp.float32)
    adj = jax.random.uniform(k2, (N, N), jnp.float32)
    out = jax.block_until_ready(lightgcn_forward(x, adj))
    ref = (adj + jnp.eye(N, dtype=jnp.float32)) @ x
    assert out.shape == (N, F)
    assert jnp.allclose(out, ref, atol=1e-4, rtol=1e-4)

    # Multi-row-tile + padding path (resident-x regime).
    N2, F2 = 300, 200
    x2 = jax.random.normal(k3, (N2, F2), jnp.float32)
    adj2 = jax.random.uniform(k4, (N2, N2), jnp.float32)
    out2 = jax.block_until_ready(lightgcn_forward(x2, adj2))
    ref2 = (adj2 + jnp.eye(N2, dtype=jnp.float32)) @ x2
    assert out2.shape == (N2, F2)
    assert jnp.allclose(out2, ref2, atol=1e-3, rtol=1e-3)

    # bf16 inputs with f32 accumulation (halves the dominant adj HBM stream).
    out2_bf16 = jax.block_until_ready(
        lightgcn_forward(x2, adj2, compute_dtype=jnp.bfloat16))
    rel_err = jnp.max(jnp.abs(out2_bf16 - ref2)) / jnp.max(jnp.abs(ref2))
    assert rel_err < 2e-2

    # Rectangular-tile / multi-step reduction path (what large graphs use):
    # force it by disabling the resident-x regime and capping bk.
    N3, F3 = 2000, 100
    x3 = jax.random.normal(k5, (N3, F3), jnp.float32)
    adj3 = jax.random.uniform(k6, (N3, N3), jnp.float32)
    out3 = jax.block_until_ready(
        lightgcn_forward(x3, adj3, residency_budget_bytes=0, max_block_k=1024))
    ref3 = (adj3 + jnp.eye(N3, dtype=jnp.float32)) @ x3
    rel_err3 = jnp.max(jnp.abs(out3 - ref3)) / jnp.max(jnp.abs(ref3))
    assert out3.shape == (N3, F3)
    assert rel_err3 < 5e-3

    print("KERNEL_OK")
</pallas_src>

<mosaic_0001>
module attributes {stable_mosaic.version = 11 : i64} {
  func.func @kernel(%arg0: i32, %arg1: memref<128x128xf32, #tpu.memory_space<vmem>>, %arg2: memref<128x128xf32, #tpu.memory_space<vmem>>, %arg3: memref<128x128xf32, #tpu.memory_space<vmem>>) attributes {dimension_semantics = [#tpu.dimension_semantics<parallel>], iteration_bounds = array<i64: 1>, scalar_prefetch = 0 : i64, scratch_operands = 0 : i64, tpu.core_type = #tpu.core_type<tc>, window_params = [{transform_indices = @transform_0, window_bounds = array<i64: 128, 128>}, {pipeline_mode = #tpu.pipeline_mode<synchronous>, transform_indices = @transform_1, window_bounds = array<i64: 128, 128>}, {transform_indices = @transform_2, window_bounds = array<i64: 128, 128>}]} {
    %c0 = arith.constant 0 : index
    %c0_0 = arith.constant 0 : index
    %0 = vector.load %arg1[%c0, %c0_0] : memref<128x128xf32, #tpu.memory_space<vmem>>, vector<128x128xf32>
    %c0_1 = arith.constant 0 : index
    %c0_2 = arith.constant 0 : index
    %1 = vector.load %arg2[%c0_1, %c0_2] : memref<128x128xf32, #tpu.memory_space<vmem>>, vector<128x128xf32>
    %cst = arith.constant dense<0.000000e+00> : vector<128x128xf32>
    %2 = tpu.matmul %0, %1, %cst {dimension_numbers = #tpu.dot_dimension_numbers<[1], [0], [0], [1], [0, 0, 1, 1], [], []>} : vector<128x128xf32>, vector<128x128xf32>, vector<128x128xf32> -> vector<128x128xf32>
    %c128_i32 = arith.constant 128 : i32
    %3 = arith.muli %arg0, %c128_i32 : i32
    %4 = tpu.assume_multiple %3, 128 : i32
    %5 = arith.index_cast %4 : i32 to index
    %c0_3 = arith.constant 0 : index
    %6 = vector.load %arg2[%5, %c0_3] : memref<128x128xf32, #tpu.memory_space<vmem>>, vector<128x128xf32>
    %7 = arith.addf %2, %6 : vector<128x128xf32>
    %c0_4 = arith.constant 0 : index
    %c0_5 = arith.constant 0 : index
    %8 = vector.load %arg3[%c0_4, %c0_5] : memref<128x128xf32, #tpu.memory_space<vmem>>, vector<128x128xf32>
    tpu.vector_store %arg3[%c0_4, %c0_5], %7 {strides = array<i32>} : memref<128x128xf32, #tpu.memory_space<vmem>>, vector<128x128xf32>,
    return
  }
  func.func @transform_0(%arg0: i32) -> (i32, i32) {
    %c0_i32 = arith.constant 0 : i32
    %c0_i32_0 = arith.constant 0 : i32
    return %arg0, %c0_i32 : i32, i32
  }
  func.func @transform_1(%arg0: i32) -> (i32, i32) {
    %c0_i32 = arith.constant 0 : i32
    %c0_i32_0 = arith.constant 0 : i32
    %c0_i32_1 = arith.constant 0 : i32
    return %c0_i32, %c0_i32_0 : i32, i32
  }
  func.func @transform_2(%arg0: i32) -> (i32, i32) {
    %c0_i32 = arith.constant 0 : i32
    %c0_i32_0 = arith.constant 0 : i32
    return %arg0, %c0_i32 : i32, i32
  }
}

</mosaic_0001>

<bundles_post_ra>
// kernel: tpu_custom_call.1
= control target key start
LH: loop header
LB: loop body
LE: loop exit
PB: predicated region body
PF: predicated region fallthrough
CT: control target
= control target key end

     0   :  { %7 = vsyncpa [#allocation3], 0  ;;  %s462_s0 = inlined_call_operand.hbm [shape: f32[128,128], index: 0, kind: input, shape index: {}]   ;;  %s463_s1 = inlined_call_operand.hbm [shape: f32[128,128], index: 1, kind: input, shape index: {}]   ;;  %s464_s2 = inlined_call_operand.hbm [shape: f32[128,128], index: 2, kind: output, shape index: {}]  }
   0x1   :  { %8 = vsyncpa [#allocation6], 0 }
   0x2   :  { %9 = vsyncpa [#allocation4], 0  ;;  %s14_s11 = sshll.u32 %s462_s0, 4  ;;  %s326_s12 = smov [#allocation2]   ;;  %s15_s11 = int_to_ptr.hbm [resolvable:$true] %s14_s11 }
   0x3   :  { %s16_s13 = sshll.u32 %s326_s12, 4  ;;  %s27_s16 = sshll.u32 %s463_s1, 4  ;;  %s17_s13 = int_to_ptr.vmem [resolvable:$true] %s16_s13  ;;  %s28_s16 = int_to_ptr.hbm [resolvable:$true] %s27_s16 }
   0x4   :  { %s327_s17 = smov 128   ;;  %s328_s18 = smov 8  }
   0x5   :  { %22 = dma.hbm_to_vmem [thread:$0]  %s15_s11, 2048, %s17_s13, [#allocation3], %s327_s17, %s327_s17, %s328_s18  }
   0x6   :  { %s329_s19 = smov [#allocation5]  }
   0x7   :  { %s29_s20 = sshll.u32 %s329_s19, 4  ;;  %s30_s20 = int_to_ptr.vmem [resolvable:$true] %s29_s20 }
   0x8   :  { %35 = dma.hbm_to_vmem [thread:$0]  %s28_s16, 2048, %s30_s20, [#allocation6], %s327_s17, %s327_s17, %s328_s18  }
   0x9   :  { %320 = dma.done.wait [#allocation3], 2048  }
   0xa   :  { %321 = vsyncadd [#allocation3], 4294965248 }
   0xb   :  { %322 = dma.done.wait [#allocation6], 2048  }
   0xc   :  { %323 = vsyncadd [#allocation6], 4294965248  ;;  %v358_v0 = vld [vmem:[#allocation5 + $0x78] sm:$0xff]  ;;  %v360_v1 = vld [vmem:[#allocation5 + $0x70] sm:$0xff]  ;;  %s330_s0 = smov [#allocation7]   ;;  %s181_s23 = sshll.u32 %s464_s2, 4  ;;  %s182_s23 = int_to_ptr.hbm [resolvable:$true] %s181_s23 }
   0xd   :  { %196 = vmatpush.msra.mxu2 %v358_v0  ;;  %197 = vmatpush.msra.mxu3 %v358_v0  ;;  %v364_v2 = vld [vmem:[#allocation5 + $0x68] sm:$0xff]  ;;  %v370_v3 = vld [vmem:[#allocation5 + $0x60] sm:$0xff]  ;;  %v376_v4 = vld [vmem:[#allocation5 + $0x58] sm:$0xff]  ;;  %s179_s1 = sshll.u32 %s330_s0, 4  ;;  %s180_s1 = int_to_ptr.vmem [resolvable:$true] %s179_s1 }
   0xe   :  { %94 = vmatpush.msra.mxu0 %v358_v0  ;;  %195 = vmatpush.msra.mxu1 %v358_v0  ;;  %v382_v5 = vld [vmem:[#allocation5 + $0x50] sm:$0xff]  ;;  %v388_v6 = vld [vmem:[#allocation5 + $0x48] sm:$0xff]  ;;  %v394_v7 = vld [vmem:[#allocation5 + $0x40] sm:$0xff] }
   0xf   :  { %199 = vmatpush.msra.mxu2 %v360_v1  ;;  %200 = vmatpush.msra.mxu3 %v360_v1  ;;  %v400_v8 = vld [vmem:[#allocation5 + $0x38] sm:$0xff]  ;;  %v406_v9 = vld [vmem:[#allocation5 + $0x30] sm:$0xff]  ;;  %v412_v10 = vld [vmem:[#allocation5 + $0x28] sm:$0xff] }
  0x10   :  { %95 = vmatpush.msra.mxu0 %v360_v1  ;;  %198 = vmatpush.msra.mxu1 %v360_v1  ;;  %v418_v11 = vld [vmem:[#allocation5 + $0x20] sm:$0xff]  ;;  %v424_v12 = vld [vmem:[#allocation5 + $0x18] sm:$0xff]  ;;  %v430_v13 = vld [vmem:[#allocation5 + $0x10] sm:$0xff] }
  0x11   :  { %202 = vmatpush.msra.mxu2 %v364_v2  ;;  %203 = vmatpush.msra.mxu3 %v364_v2  ;;  %v61_v14 = vld [vmem:[#allocation5 + $0x8] sm:$0xff]  ;;  %v60_v15 = vld [vmem:[#allocation5] sm:$0xff]  ;;  %v54_v24 = vld [vmem:[#allocation2 + $0x50] sm:$0xff] }
  0x12   :  { %96 = vmatpush.msra.mxu0 %v364_v2  ;;  %201 = vmatpush.msra.mxu1 %v364_v2  ;;  %v52_v16 = vld [vmem:[#allocation2 + $0x40] sm:$0xff]  ;;  %v53_v20 = vld [vmem:[#allocation2 + $0x48] sm:$0xff]  ;;  %v58_v25 = vld [vmem:[#allocation2 + $0x70] sm:$0xff] }
  0x13   :  { %205 = vmatpush.msra.mxu2 %v370_v3  ;;  %206 = vmatpush.msra.mxu3 %v370_v3  ;;  %v56_v17 = vld [vmem:[#allocation2 + $0x60] sm:$0xff]  ;;  %v57_v21 = vld [vmem:[#allocation2 + $0x68] sm:$0xff]  ;;  %v46_v26 = vld [vmem:[#allocation2 + $0x10] sm:$0xff] }
  0x14   :  { %97 = vmatpush.msra.mxu0 %v370_v3  ;;  %204 = vmatpush.msra.mxu1 %v370_v3  ;;  %v44_v18 = vld [vmem:[#allocation2] sm:$0xff]  ;;  %v45_v22 = vld [vmem:[#allocation2 + $0x8] sm:$0xff]  ;;  %v50_v27 = vld [vmem:[#allocation2 + $0x30] sm:$0xff] }
  0x15   :  { %208 = vmatpush.msra.mxu2 %v376_v4  ;;  %209 = vmatpush.msra.mxu3 %v376_v4  ;;  %v48_v19 = vld [vmem:[#allocation2 + $0x20] sm:$0xff]  ;;  %v49_v23 = vld [vmem:[#allocation2 + $0x28] sm:$0xff]  ;;  %v55_v28 = vld [vmem:[#allocation2 + $0x58] sm:$0xff] }
  0x16   :  { %98 = vmatpush.msra.mxu0 %v376_v4  ;;  %207 = vmatpush.msra.mxu1 %v376_v4  ;;  %v59_v29 = vld [vmem:[#allocation2 + $0x78] sm:$0xff] }
  0x17   :  { %211 = vmatpush.msra.mxu2 %v382_v5  ;;  %212 = vmatpush.msra.mxu3 %v382_v5  ;;  %v47_v30 = vld [vmem:[#allocation2 + $0x18] sm:$0xff] }
  0x18   :  { %99 = vmatpush.msra.mxu0 %v382_v5  ;;  %210 = vmatpush.msra.mxu1 %v382_v5  ;;  %v51_v31 = vld [vmem:[#allocation2 + $0x38] sm:$0xff] }
  0x19   :  { %214 = vmatpush.msra.mxu2 %v388_v6  ;;  %215 = vmatpush.msra.mxu3 %v388_v6 }
  0x1a   :  { %100 = vmatpush.msra.mxu0 %v388_v6  ;;  %213 = vmatpush.msra.mxu1 %v388_v6 }
  0x1b   :  { %217 = vmatpush.msra.mxu2 %v394_v7  ;;  %218 = vmatpush.msra.mxu3 %v394_v7 }
  0x1c   :  { %101 = vmatpush.msra.mxu0 %v394_v7  ;;  %216 = vmatpush.msra.mxu1 %v394_v7 }
  0x1d   :  { %220 = vmatpush.msra.mxu2 %v400_v8  ;;  %221 = vmatpush.msra.mxu3 %v400_v8 }
  0x1e   :  { %102 = vmatpush.msra.mxu0 %v400_v8  ;;  %219 = vmatpush.msra.mxu1 %v400_v8 }
  0x1f   :  { %223 = vmatpush.msra.mxu2 %v406_v9  ;;  %224 = vmatpush.msra.mxu3 %v406_v9 }
  0x20   :  { %103 = vmatpush.msra.mxu0 %v406_v9  ;;  %222 = vmatpush.msra.mxu1 %v406_v9 }
  0x21   :  { %226 = vmatpush.msra.mxu2 %v412_v10  ;;  %227 = vmatpush.msra.mxu3 %v412_v10 }
  0x22   :  { %104 = vmatpush.msra.mxu0 %v412_v10  ;;  %225 = vmatpush.msra.mxu1 %v412_v10 }
  0x23   :  { %229 = vmatpush.msra.mxu2 %v418_v11  ;;  %230 = vmatpush.msra.mxu3 %v418_v11 }
  0x24   :  { %105 = vmatpush.msra.mxu0 %v418_v11  ;;  %228 = vmatpush.msra.mxu1 %v418_v11 }
  0x25   :  { %232 = vmatpush.msra.mxu2 %v424_v12  ;;  %233 = vmatpush.msra.mxu3 %v424_v12 }
  0x26   :  { %106 = vmatpush.msra.mxu0 %v424_v12  ;;  %231 = vmatpush.msra.mxu1 %v424_v12 }
  0x27   :  { %235 = vmatpush.msra.mxu2 %v430_v13  ;;  %236 = vmatpush.msra.mxu3 %v430_v13 }
  0x28   :  { %107 = vmatpush.msra.mxu0 %v430_v13  ;;  %234 = vmatpush.msra.mxu1 %v430_v13 }
  0x29   :  { %238 = vmatpush.msra.mxu2 %v61_v14  ;;  %239 = vmatpush.msra.mxu3 %v61_v14 }
  0x2a   :  { %108 = vmatpush.msra.mxu0 %v61_v14  ;;  %237 = vmatpush.msra.mxu1 %v61_v14 }
  0x2b   :  { %241 = vmatpush.msra.mxu2 %v60_v15  ;;  %242 = vmatpush.msra.mxu3 %v60_v15 }
  0x2c   :  { %134 = vmatmul.f32.vlgmr.msra.gmra.mxu2 %v52_v16  ;;  %146 = vmatmul.f32.vlgmr.msra.gmra.mxu3 %v56_v17 }
  0x2d   :  { %109 = vmatpush.msra.mxu0 %v60_v15  ;;  %240 = vmatpush.msra.mxu1 %v60_v15 }
  0x2e   :  { %110 = vmatmul.f32.vlgmr.msra.gmra.mxu0 %v44_v18  ;;  %122 = vmatmul.f32.vlgmr.msra.gmra.mxu1 %v48_v19 }
  0x34   :  { %137 = vmatmul.f32.gmra.mxu2 %v53_v20  ;;  %149 = vmatmul.f32.gmra.mxu3 %v57_v21 }
  0x36   :  { %113 = vmatmul.f32.gmra.mxu0 %v45_v22  ;;  %125 = vmatmul.f32.gmra.mxu1 %v49_v23 }
  0x3c   :  { %140 = vmatmul.f32.gmra.mxu2 %v54_v24  ;;  %152 = vmatmul.f32.gmra.mxu3 %v58_v25 }
  0x3e   :  { %116 = vmatmul.f32.gmra.mxu0 %v46_v26  ;;  %128 = vmatmul.f32.gmra.mxu1 %v50_v27 }
  0x44   :  { %143 = vmatmul.f32.gmra.mxu2 %v55_v28  ;;  %155 = vmatmul.f32.gmra.mxu3 %v59_v29 }
  0x46   :  { %119 = vmatmul.f32.gmra.mxu0 %v47_v30  ;;  %131 = vmatmul.f32.gmra.mxu1 %v51_v31 }
  0xab   :  { %v111_v32 = vpop.f32.mrf.mxu0  ;;  %v123_v33 = vpop.f32.mrf.mxu1 }
  0xac   :  { %v112_v34 = vadd.f32 %v111_v32, %v60_v15  ;;  %v124_v35 = vadd.f32 %v123_v33, %v418_v11 }
  0xae   :  { %159 = vst [vmem:[#allocation7] sm:$0xff] %v112_v34 }
  0xaf   :  { %163 = vst [vmem:[#allocation7 + $0x20] sm:$0xff] %v124_v35  ;;  %v135_v36 = vpop.f32.mrf.mxu2  ;;  %v147_v37 = vpop.f32.mrf.mxu3 }
  0xb0   :  { %v136_v38 = vadd.f32 %v135_v36, %v394_v7  ;;  %v148_v39 = vadd.f32 %v147_v37, %v370_v3 }
  0xb2   :  { %167 = vst [vmem:[#allocation7 + $0x40] sm:$0xff] %v136_v38 }
  0xb3   :  { %171 = vst [vmem:[#allocation7 + $0x60] sm:$0xff] %v148_v39  ;;  %v114_v40 = vpop.f32.mrf.mxu0  ;;  %v126_v41 = vpop.f32.mrf.mxu1 }
  0xb4   :  { %v115_v42 = vadd.f32 %v114_v40, %v61_v14  ;;  %v127_v43 = vadd.f32 %v126_v41, %v412_v10 }
  0xb6   :  { %160 = vst [vmem:[#allocation7 + $0x8] sm:$0xff] %v115_v42 }
  0xb7   :  { %164 = vst [vmem:[#allocation7 + $0x28] sm:$0xff] %v127_v43  ;;  %v138_v44 = vpop.f32.mrf.mxu2  ;;  %v150_v45 = vpop.f32.mrf.mxu3 }
  0xb8   :  { %v139_v46 = vadd.f32 %v138_v44, %v388_v6  ;;  %v151_v47 = vadd.f32 %v150_v45, %v364_v2 }
  0xba   :  { %168 = vst [vmem:[#allocation7 + $0x48] sm:$0xff] %v139_v46 }
  0xbb   :  { %172 = vst [vmem:[#allocation7 + $0x68] sm:$0xff] %v151_v47  ;;  %v117_v48 = vpop.f32.mrf.mxu0  ;;  %v129_v49 = vpop.f32.mrf.mxu1 }
  0xbc   :  { %v118_v50 = vadd.f32 %v117_v48, %v430_v13  ;;  %v130_v51 = vadd.f32 %v129_v49, %v406_v9 }
  0xbe   :  { %161 = vst [vmem:[#allocation7 + $0x10] sm:$0xff] %v118_v50 }
  0xbf   :  { %165 = vst [vmem:[#allocation7 + $0x30] sm:$0xff] %v130_v51  ;;  %v141_v52 = vpop.f32.mrf.mxu2  ;;  %v153_v53 = vpop.f32.mrf.mxu3 }
  0xc0   :  { %v142_v54 = vadd.f32 %v141_v52, %v382_v5  ;;  %v154_v55 = vadd.f32 %v153_v53, %v360_v1 }
  0xc2   :  { %169 = vst [vmem:[#allocation7 + $0x50] sm:$0xff] %v142_v54 }
  0xc3   :  { %173 = vst [vmem:[#allocation7 + $0x70] sm:$0xff] %v154_v55  ;;  %v120_v56 = vpop.f32.mrf.mxu0  ;;  %v132_v57 = vpop.f32.mrf.mxu1 }
  0xc4   :  { %v121_v58 = vadd.f32 %v120_v56, %v424_v12  ;;  %v133_v59 = vadd.f32 %v132_v57, %v400_v8 }
  0xc6   :  { %162 = vst [vmem:[#allocation7 + $0x18] sm:$0xff] %v121_v58 }
  0xc7   :  { %166 = vst [vmem:[#allocation7 + $0x38] sm:$0xff] %v133_v59  ;;  %v144_v60 = vpop.f32.mrf.mxu2  ;;  %v156_v61 = vpop.f32.mrf.mxu3 }
  0xc8   :  { %v145_v62 = vadd.f32 %v144_v60, %v376_v4  ;;  %v157_v63 = vadd.f32 %v156_v61, %v358_v0 }
  0xca   :  { %170 = vst [vmem:[#allocation7 + $0x58] sm:$0xff] %v145_v62 }
  0xcb   :  { %174 = vst [vmem:[#allocation7 + $0x78] sm:$0xff] %v157_v63 }
  0xcc   :  { %187 = dma.vmem_to_hbm [thread:$0]  %s180_s1, 2048, %s182_s23, [#allocation4], %s327_s17, %s327_s17, %s328_s18  }
  0xcd   :  { %324 = dma.done.wait [#allocation4], 2048  }
  0xce   :  { %325 = vsyncadd [#allocation4], 4294965248 }
  0xcf   :  { %192 = vsyncpa [#allocation3], 1 }
  0xd0   :  { %193 = vsyncpa [#allocation6], 1 }
  0xd1   :  { %194 = vsyncpa [#allocation4], 1 }

</bundles_post_ra>
